<compile_context>
chip_gen: v7x
topology: tpu7x:2x2x1
jax: 0.10.0
libtpu: 0.0.40
codegen_flags: <defaults>
</compile_context>

<pallas_src>
import functools

import jax
import jax.numpy as jnp
from jax.experimental import pallas as pl
from jax.experimental.pallas import tpu as pltpu


def _round_up(x, m):
    return ((x + m - 1) // m) * m


def tcn_conv(in_feat, weight, bias, alpha=None, hidden=None, *,
             kernel_size=3, dilation=1, padding=0, act='prelu',
             lane_tile=512):
    """Causal dilated Conv1d + optional PReLU/sigmoid, Pallas TPU kernel.

    in_feat: [B, Cin, T]  (PyTorch NCL layout)
    weight:  [Cout, Cin, K]  (PyTorch Conv1d weight layout)
    bias:    [Cout]
    alpha:   [Cout] per-channel PReLU slope (used when act == 'prelu')
    hidden:  optional [B, Cin, padding] streaming state (prepended like the
             PyTorch module does with torch.cat([hidden, in_feat], dim=-1))

    Returns (res [B, Cout, Tout], new_hidden [B, Cin, padding]).
    """
    B, Cin, T = in_feat.shape
    Cout, Cin_w, K = weight.shape
    assert Cin_w == Cin and K == kernel_size

    x32 = in_feat.astype(jnp.float32)
    if hidden is None:
        pad_feat = jnp.pad(x32, ((0, 0), (0, 0), (padding, 0)))
    else:
        pad_feat = jnp.concatenate([hidden.astype(jnp.float32), x32], axis=-1)
    Tp = pad_feat.shape[-1]

    halo = dilation * (K - 1)                    # receptive-field overhang
    Tout = Tp - halo
    assert Tout >= 1

    # Lane tile (time axis == lanes).  Multiple of 128, large enough to hold
    # the halo, capped by lane_tile (default 512 per the tiling sweep).
    TT = max(128, min(lane_tile, _round_up(Tout, 128)))
    TT = max(TT, _round_up(halo + 1, 128))
    nT = pl.cdiv(Tout, TT)
    Tout_p = nT * TT
    Tin_p = (nT + 1) * TT                        # +1 tile so the "next" block
                                                 # of the last tile is in-bounds
    # Single pad: causal pad already applied above; here only the tile
    # round-up zeros.  Cast to bf16 once -> halves HBM bytes into the kernel.
    x_in = jnp.pad(pad_feat, ((0, 0), (0, 0), (0, Tin_p - Tp))).astype(jnp.bfloat16)

    # Per-tap weights [K, Cout, Cin] in bf16 for the MXU.
    w_taps = jnp.transpose(weight, (2, 0, 1)).astype(jnp.bfloat16)
    b_col = bias.reshape(Cout, 1).astype(jnp.float32)
    if alpha is None:
        alpha = jnp.zeros((Cout,), jnp.float32)
    a_col = alpha.reshape(Cout, 1).astype(jnp.float32)

    def kernel(cur_ref, nxt_ref, w_ref, b_ref, a_ref, o_ref):
        # cur_ref / nxt_ref: [Cin, TT] bf16 (time tile j and j+1 of pad_feat)
        # w_ref: [K, Cout, Cin] bf16, b_ref/a_ref: [Cout, 1] f32
        # o_ref: [Cout, TT] f32  (lane-dense store)
        cur = cur_ref[...]
        acc = jnp.dot(w_ref[0], cur, preferred_element_type=jnp.float32)
        if halo > 0:
            nxt_halo = nxt_ref[:, :halo]         # only the halo lanes of tile j+1
            for k in range(1, K):                # in-kernel "im2col": shifted
                o = k * dilation                 # windows, no HBM duplication
                xs = jnp.concatenate([cur[:, o:], nxt_halo[:, :o]], axis=-1)
                acc = acc + jnp.dot(w_ref[k], xs,
                                    preferred_element_type=jnp.float32)
        y = acc + b_ref[...]
        if act == 'prelu':
            y = jnp.where(y >= 0.0, y, y * a_ref[...])
        elif act == 'sigmoid':
            y = jax.nn.sigmoid(y)
        o_ref[...] = y

    out = pl.pallas_call(
        kernel,
        out_shape=jax.ShapeDtypeStruct((B, Cout, Tout_p), jnp.float32),
        grid=(B, nT),
        in_specs=[
            pl.BlockSpec((None, Cin, TT), lambda b, j: (b, 0, j)),      # tile j
            pl.BlockSpec((None, Cin, TT), lambda b, j: (b, 0, j + 1)),  # tile j+1 (halo)
            pl.BlockSpec((K, Cout, Cin), lambda b, j: (0, 0, 0)),       # weights
            pl.BlockSpec((Cout, 1), lambda b, j: (0, 0)),               # bias
            pl.BlockSpec((Cout, 1), lambda b, j: (0, 0)),               # PReLU alpha
        ],
        out_specs=pl.BlockSpec((None, Cout, TT), lambda b, j: (b, 0, j)),
        compiler_params=pltpu.CompilerParams(
            dimension_semantics=("parallel", "parallel")),
    )(x_in, x_in, w_taps, b_col, a_col)

    res = out if Tout_p == Tout else out[:, :, :Tout]
    # PyTorch: pad_feat[:, :, -padding:]  (note: -0 would mean "everything")
    new_hidden = pad_feat[:, :, Tp - padding:] if padding > 0 else pad_feat
    return res, new_hidden


# ----------------------------- plain-JAX reference -------------------------

def tcn_conv_reference(in_feat, weight, bias, alpha, hidden=None, *,
                       dilation=1, padding=0, act='prelu'):
    x32 = in_feat.astype(jnp.float32)
    if hidden is None:
        pad_feat = jnp.pad(x32, ((0, 0), (0, 0), (padding, 0)))
    else:
        pad_feat = jnp.concatenate([hidden.astype(jnp.float32), x32], axis=-1)
    # Match the kernel's bf16 operand rounding so the comparison is tight.
    xb = pad_feat.astype(jnp.bfloat16).astype(jnp.float32)
    wb = weight.astype(jnp.bfloat16).astype(jnp.float32)
    res = jax.lax.conv_general_dilated(
        xb, wb, window_strides=(1,), padding='VALID',
        rhs_dilation=(dilation,),
        dimension_numbers=('NCH', 'OIH', 'NCH'),
        preferred_element_type=jnp.float32)
    res = res + bias.astype(jnp.float32)[None, :, None]
    if act == 'prelu':
        res = jnp.where(res >= 0, res, res * alpha[None, :, None])
    elif act == 'sigmoid':
        res = jax.nn.sigmoid(res)
    hid = pad_feat[:, :, pad_feat.shape[-1] - padding:] if padding > 0 else pad_feat
    return res, hid


# ----------------------------------- main -----------------------------------

if __name__ == "__main__":
    key = jax.random.PRNGKey(0)
    k1, k2, k3, k4 = jax.random.split(key, 4)

    # Shapes consistent with the deploy net: 64 channels (CHANNEL2 * 4),
    # kernel 3, dilation 8, causal padding = dilation * (k - 1).
    B, Cin, Cout, K, dil = 2, 64, 64, 3, 8
    padding = dil * (K - 1)
    T1, T2 = 700, 300            # first chunk (hidden=None) + streaming chunk

    x1 = jax.random.normal(k1, (B, Cin, T1), jnp.float32)
    x2 = jax.random.normal(k4, (B, Cin, T2), jnp.float32)
    weight = 0.1 * jax.random.normal(k2, (Cout, Cin, K), jnp.float32)
    bias = 0.05 * jax.random.normal(k3, (Cout,), jnp.float32)
    alpha = 0.25 * jnp.ones((Cout,), jnp.float32)   # nn.PReLU(Cout) default

    run = jax.jit(functools.partial(tcn_conv, kernel_size=K, dilation=dil,
                                    padding=padding, act='prelu'))

    res1, hid1 = run(x1, weight, bias, alpha, None)       # hidden=None path
    res2, hid2 = run(x2, weight, bias, alpha, hid1)       # streaming path
    jax.block_until_ready((res1, hid1, res2, hid2))

    ref1, rhid1 = tcn_conv_reference(x1, weight, bias, alpha, None,
                                     dilation=dil, padding=padding, act='prelu')
    ref2, rhid2 = tcn_conv_reference(x2, weight, bias, alpha, rhid1,
                                     dilation=dil, padding=padding, act='prelu')

    assert res1.shape == (B, Cout, T1) and hid1.shape == (B, Cin, padding)
    assert res2.shape == (B, Cout, T2) and hid2.shape == (B, Cin, padding)
    assert float(jnp.max(jnp.abs(res1 - ref1))) < 5e-3
    assert float(jnp.max(jnp.abs(res2 - ref2))) < 5e-3
    assert float(jnp.max(jnp.abs(hid1 - rhid1))) == 0.0
    assert float(jnp.max(jnp.abs(hid2 - rhid2))) == 0.0

    print("KERNEL_OK")
</pallas_src>

<mosaic_0001>
module attributes {stable_mosaic.version = 11 : i64} {
  func.func @kernel(%arg0: i32, %arg1: i32, %arg2: memref<1x64x512xbf16, #tpu.memory_space<vmem>>, %arg3: memref<1x64x512xbf16, #tpu.memory_space<vmem>>, %arg4: memref<3x64x64xbf16, #tpu.memory_space<vmem>>, %arg5: memref<64x1xf32, #tpu.memory_space<vmem>>, %arg6: memref<64x1xf32, #tpu.memory_space<vmem>>, %arg7: memref<1x64x512xf32, #tpu.memory_space<vmem>>) attributes {dimension_semantics = [#tpu.dimension_semantics<parallel>, #tpu.dimension_semantics<parallel>], iteration_bounds = array<i64: 2, 2>, scalar_prefetch = 0 : i64, scratch_operands = 0 : i64, tpu.core_type = #tpu.core_type<tc>, window_params = [{transform_indices = @transform_0, window_bounds = array<i64: 1, 64, 512>}, {transform_indices = @transform_1, window_bounds = array<i64: 1, 64, 512>}, {pipeline_mode = #tpu.pipeline_mode<synchronous>, transform_indices = @transform_2, window_bounds = array<i64: 3, 64, 64>}, {pipeline_mode = #tpu.pipeline_mode<synchronous>, transform_indices = @transform_3, window_bounds = array<i64: 64, 1>}, {pipeline_mode = #tpu.pipeline_mode<synchronous>, transform_indices = @transform_4, window_bounds = array<i64: 64, 1>}, {transform_indices = @transform_5, window_bounds = array<i64: 1, 64, 512>}]} {
    %c0 = arith.constant 0 : index
    %c0_0 = arith.constant 0 : index
    %c0_1 = arith.constant 0 : index
    %0 = vector.load %arg2[%c0, %c0_0, %c0_1] : memref<1x64x512xbf16, #tpu.memory_space<vmem>>, vector<1x64x512xbf16>
    %1 = vector.shape_cast %0 : vector<1x64x512xbf16> to vector<64x512xbf16>
    %c0_2 = arith.constant 0 : index
    %c0_3 = arith.constant 0 : index
    %c0_4 = arith.constant 0 : index
    %2 = vector.load %arg4[%c0_2, %c0_3, %c0_4] : memref<3x64x64xbf16, #tpu.memory_space<vmem>>, vector<1x64x64xbf16>
    %3 = vector.shape_cast %2 : vector<1x64x64xbf16> to vector<64x64xbf16>
    %cst = arith.constant dense<0.000000e+00> : vector<64x512xf32>
    %4 = tpu.matmul %3, %1, %cst {dimension_numbers = #tpu.dot_dimension_numbers<[1], [0], [0], [1], [0, 0, 1, 1], [], []>} : vector<64x64xbf16>, vector<64x512xbf16>, vector<64x512xf32> -> vector<64x512xf32>
    %c0_5 = arith.constant 0 : index
    %c0_6 = arith.constant 0 : index
    %c0_7 = arith.constant 0 : index
    %5 = vector.load %arg3[%c0_5, %c0_6, %c0_7] : memref<1x64x512xbf16, #tpu.memory_space<vmem>>, vector<1x64x16xbf16>
    %6 = vector.shape_cast %5 : vector<1x64x16xbf16> to vector<64x16xbf16>
    %7 = vector.extract_strided_slice %1 {offsets = [0, 8], sizes = [64, 504], strides = [1, 1]} : vector<64x512xbf16> to vector<64x504xbf16>
    %8 = vector.extract_strided_slice %6 {offsets = [0, 0], sizes = [64, 8], strides = [1, 1]} : vector<64x16xbf16> to vector<64x8xbf16>
    %9 = tpu.concatenate %7, %8 in 1 : vector<64x504xbf16>, vector<64x8xbf16> -> vector<64x512xbf16>
    %c1 = arith.constant 1 : index
    %c0_8 = arith.constant 0 : index
    %c0_9 = arith.constant 0 : index
    %10 = vector.load %arg4[%c1, %c0_8, %c0_9] : memref<3x64x64xbf16, #tpu.memory_space<vmem>>, vector<1x64x64xbf16>
    %11 = vector.shape_cast %10 : vector<1x64x64xbf16> to vector<64x64xbf16>
    %cst_10 = arith.constant dense<0.000000e+00> : vector<64x512xf32>
    %12 = tpu.matmul %11, %9, %cst_10 {dimension_numbers = #tpu.dot_dimension_numbers<[1], [0], [0], [1], [0, 0, 1, 1], [], []>} : vector<64x64xbf16>, vector<64x512xbf16>, vector<64x512xf32> -> vector<64x512xf32>
    %13 = arith.addf %4, %12 : vector<64x512xf32>
    %14 = vector.extract_strided_slice %1 {offsets = [0, 16], sizes = [64, 496], strides = [1, 1]} : vector<64x512xbf16> to vector<64x496xbf16>
    %15 = tpu.concatenate %14, %6 in 1 : vector<64x496xbf16>, vector<64x16xbf16> -> vector<64x512xbf16>
    %c2 = arith.constant 2 : index
    %c0_11 = arith.constant 0 : index
    %c0_12 = arith.constant 0 : index
    %16 = vector.load %arg4[%c2, %c0_11, %c0_12] : memref<3x64x64xbf16, #tpu.memory_space<vmem>>, vector<1x64x64xbf16>
    %17 = vector.shape_cast %16 : vector<1x64x64xbf16> to vector<64x64xbf16>
    %cst_13 = arith.constant dense<0.000000e+00> : vector<64x512xf32>
    %18 = tpu.matmul %17, %15, %cst_13 {dimension_numbers = #tpu.dot_dimension_numbers<[1], [0], [0], [1], [0, 0, 1, 1], [], []>} : vector<64x64xbf16>, vector<64x512xbf16>, vector<64x512xf32> -> vector<64x512xf32>
    %19 = arith.addf %13, %18 : vector<64x512xf32>
    %c0_14 = arith.constant 0 : index
    %c0_15 = arith.constant 0 : index
    %20 = vector.load %arg5[%c0_14, %c0_15] : memref<64x1xf32, #tpu.memory_space<vmem>>, vector<64x1xf32>
    %21 = vector.broadcast %20 : vector<64x1xf32> to vector<64x512xf32>
    %22 = arith.addf %19, %21 : vector<64x512xf32>
    %cst_16 = arith.constant 0.000000e+00 : f32
    %23 = vector.broadcast %cst_16 : f32 to vector<64x512xf32>
    %24 = arith.cmpf oge, %22, %23 : vector<64x512xf32>
    %c0_17 = arith.constant 0 : index
    %c0_18 = arith.constant 0 : index
    %25 = vector.load %arg6[%c0_17, %c0_18] : memref<64x1xf32, #tpu.memory_space<vmem>>, vector<64x1xf32>
    %26 = vector.broadcast %25 : vector<64x1xf32> to vector<64x512xf32>
    %27 = arith.mulf %22, %26 : vector<64x512xf32>
    %28 = arith.select %24, %22, %27 : vector<64x512xi1>, vector<64x512xf32>
    %c0_19 = arith.constant 0 : index
    %c0_20 = arith.constant 0 : index
    %c0_21 = arith.constant 0 : index
    %29 = vector.load %arg7[%c0_19, %c0_20, %c0_21] : memref<1x64x512xf32, #tpu.memory_space<vmem>>, vector<1x64x512xf32>
    %30 = vector.shape_cast %29 : vector<1x64x512xf32> to vector<64x512xf32>
    %31 = vector.shape_cast %28 : vector<64x512xf32> to vector<1x64x512xf32>
    tpu.vector_store %arg7[%c0_19, %c0_20, %c0_21], %31 {strides = array<i32>} : memref<1x64x512xf32, #tpu.memory_space<vmem>>, vector<1x64x512xf32>,
    return
  }
  func.func @transform_0(%arg0: i32, %arg1: i32) -> (i32, i32, i32) {
    %c0_i32 = arith.constant 0 : i32
    %c0_i32_0 = arith.constant 0 : i32
    return %arg0, %c0_i32, %arg1 : i32, i32, i32
  }
  func.func @transform_1(%arg0: i32, %arg1: i32) -> (i32, i32, i32) {
    %c1_i32 = arith.constant 1 : i32
    %0 = arith.addi %arg1, %c1_i32 : i32
    %c0_i32 = arith.constant 0 : i32
    %c0_i32_0 = arith.constant 0 : i32
    return %arg0, %c0_i32, %0 : i32, i32, i32
  }
  func.func @transform_2(%arg0: i32, %arg1: i32) -> (i32, i32, i32) {
    %c0_i32 = arith.constant 0 : i32
    %c0_i32_0 = arith.constant 0 : i32
    %c0_i32_1 = arith.constant 0 : i32
    %c0_i32_2 = arith.constant 0 : i32
    return %c0_i32, %c0_i32_0, %c0_i32_1 : i32, i32, i32
  }
  func.func @transform_3(%arg0: i32, %arg1: i32) -> (i32, i32) {
    %c0_i32 = arith.constant 0 : i32
    %c0_i32_0 = arith.constant 0 : i32
    %c0_i32_1 = arith.constant 0 : i32
    return %c0_i32, %c0_i32_0 : i32, i32
  }
  func.func @transform_4(%arg0: i32, %arg1: i32) -> (i32, i32) {
    %c0_i32 = arith.constant 0 : i32
    %c0_i32_0 = arith.constant 0 : i32
    %c0_i32_1 = arith.constant 0 : i32
    return %c0_i32, %c0_i32_0 : i32, i32
  }
  func.func @transform_5(%arg0: i32, %arg1: i32) -> (i32, i32, i32) {
    %c0_i32 = arith.constant 0 : i32
    %c0_i32_0 = arith.constant 0 : i32
    return %arg0, %c0_i32, %arg1 : i32, i32, i32
  }
}

</mosaic_0001>

<bundles_post_ra>
// kernel: tcn_conv.1
= control target key start
LH: loop header
LB: loop body
LE: loop exit
PB: predicated region body
PF: predicated region fallthrough
CT: control target
= control target key end

     0   :  { %s2706_s0 = inlined_call_operand.vmem [shape: bf16[2,64,1536], index: 0, kind: input, shape index: {}, may-alias: {0,1}]   ;;  %s2707_s1 = inlined_call_operand.vmem [shape: bf16[2,64,1536], index: 1, kind: input, shape index: {}, may-alias: {0,1}]   ;;  %s2708_s2 = inlined_call_operand.vmem [shape: bf16[3,64,64], index: 2, kind: input, shape index: {}]   ;;  %s2709_s3 = inlined_call_operand.vmem [shape: f32[64,1], index: 3, kind: input, shape index: {}]   ;;  %s2710_s4 = inlined_call_operand.vmem [shape: f32[64,1], index: 4, kind: input, shape index: {}]   ;;  %s2711_s5 = inlined_call_operand.vmem [shape: f32[2,64,1024], index: 5, kind: output, shape index: {}]  }
   0x1   :  { %2712 = sst [smem:[#allocation5_spill]] %s2706_s0 }
   0x2   :  { %s2088_s18 = smov 0   ;;  %s2090_s19 = smov 0  }
   0x3   :  { %s2092_s20 = smov 0   ;;  %s2094_s21 = smov 0  }
   0x4   :  { %s2096_s22 = smov 0   ;;  %s2098_s23 = smov 0  }
   0x5   :  { %s2100_s24 = smov 0   ;;  %s2102_s25 = smov 0  }
   0x6   :  { %s2104_s26 = smov 0  }
   0x7 LB: > { %s1693_s27 = sadd.s32 4294967295, %s2053_s26   ;;  %s24_s28 = sadd.s32 1, %s2045_s24  ;;  %s2053_s26 = sphi %s2104_s26, %s15_s26   ;;  %s2049_s25 = sphi %s2102_s25, %s2724_s25   ;;  %s2045_s24 = sphi %s2100_s24, %s2723_s24   ;;  %s2041_s23 = sphi %s2098_s23, %s2722_s23   ;;  %s2037_s22 = sphi %s2096_s22, %s2721_s22   ;;  %s2033_s21 = sphi %s2094_s21, %s2720_s21   ;;  %s2029_s20 = sphi %s2092_s20, %s2719_s20   ;;  %s2025_s19 = sphi %s2090_s19, %s2718_s19   ;;  %s2021_s18 = sphi %s2088_s18, %s2717_s18  }
   0x8   : > { %p25_p0 = scmp.ge.s32.totalorder %s24_s28, 2  ;;  %s27_s29 = sadd.s32 1, %s2049_s25 }
   0x9   : > { %s36_s30 = sadd.s32 1, %s2033_s21  ;;  %p43_p1 = scmp.ne.s32.totalorder %s2033_s21, %s2029_s20 }
   0xa   : > { %s2139_s6 = scalar_select %p25_p0, 0, %s24_s28  }
   0xb   : > { %s2726_s29 = smov (!%p25_p0, %s27_s29), %s2049_s25  ;;  %p44_p2 = scmp.eq.s32.totalorder %s2053_s26, 0 }
   0xc   : > { %s32_s7 = ssub.s32 %s2045_s24, %s2139_s6  ;;  %p29_p3 = scmp.ge.s32.totalorder %s2726_s29, 2 }
   0xd   : > { %s60_s8 = sadd.s32 1, %s2139_s6  ;;  %p2151_p4 = por %p44_p2, %p43_p1 }
   0xe   : > { %s62_s10 = ssub.s32 %s24_s28, %s60_s8  ;;  %s2728_s29 = smov (%p29_p3, %s2726_s29), 0 }
   0xf   : > { %s66_s11 = sadd.s32 1, %s2025_s19  ;;  %p73_p5 = scmp.ne.s32.totalorder %s2025_s19, %s2021_s18 }
  0x10   : > { %s31_s12 = ssub.s32 %s2049_s25, %s2728_s29  ;;  %p168_p6 = scmp.eq.s32.totalorder %s1693_s27, 3 }
  0x11   : > { %s33_s13 = sor.u32 %s32_s7, %s31_s12  ;;  %s63_s14 = sor.u32 %s62_s10, %s31_s12 }
  0x12   : > { %p34_p7 = scmp.eq.s32.totalorder %s33_s13, 0  ;;  %p64_p8 = scmp.eq.s32.totalorder %s63_s14, 0 }
  0x13   : > { %p2164_p9 = por %p73_p5, %p44_p2  ;;  %p2171_p10 = por %p168_p6, %p43_p1 }
  0x14   : > { %s2176_s17 = scalar_select %p34_p7, %s2033_s21, %s36_s30  }
  0x15   : > { %s2179_s28 = scalar_select %p64_p8, %s2025_s19, %s66_s11  }
  0x16   : > { %p1696_p11 = scmp.ge.s32.totalorder %s2053_s26, 4 }
  0x18   : > { %199 = sbr.rel (%p1696_p11) target bundleno = 65 (0x41), region = 28 }
  0x1f   : > { %202 = sbr.rel (!%p2151_p4) target bundleno = 49 (0x31), region = 32  ;;  %s204_s27 = sand.u32 (%p2151_p4), 1, %s2033_s21  }
  0x20   : > { %s1698_s7 = sshll.u32 (%p2151_p4), %s2045_s24, 2  ;;  %s1697_s8 = sshll.u32 (%p2151_p4), %s204_s27, 7 }
  0x21   : > { %s1865_s10 = smul.u32 (%p2151_p4), 96, %s2049_s25  ;;  %s2716_s0 = sld [smem:[#allocation5_spill]] (%p2151_p4) }
  0x22   : > { %s206_s9 = scalar_lea.vmem (%p2151_p4), [#allocation2], %s1697_s8 }
  0x23   : > { %s209_s12 = sadd.s32 (%p2151_p4), %s1865_s10, %s1698_s7 }
  0x24   : > { %s1699_s13 = sshll.u32 (%p2151_p4), %s209_s12, 2 }
  0x27   : > { %s2190_s11 = scalar_lea.vmem %s2716_s0, %s1699_s13 }
  0x28   : > { %v224_v0 = vld [vmem:[%s2190_s11] sm:$0xff]  ;;  %v226_v1 = vld [vmem:[%s2190_s11 + $0x8] sm:$0xff]  ;;  %v228_v2 = vld [vmem:[%s2190_s11 + $0x30] sm:$0xff] }
  0x29   : > { %225 = vst [vmem:[%s206_s9] sm:$0xff] %v224_v0  ;;  %227 = vst [vmem:[%s206_s9 + $0x8] sm:$0xff] %v226_v1  ;;  %v230_v3 = vld [vmem:[%s2190_s11 + $0x38] sm:$0xff]  ;;  %v232_v4 = vld [vmem:[%s2190_s11 + $0x60] sm:$0xff] }
  0x2a   : > { %229 = vst [vmem:[%s206_s9 + $0x10] sm:$0xff] %v228_v2  ;;  %v234_v5 = vld [vmem:[%s2190_s11 + $0x68] sm:$0xff]  ;;  %231 = vst [vmem:[%s206_s9 + $0x18] sm:$0xff] %v230_v3  ;;  %v236_v6 = vld [vmem:[%s2190_s11 + $0x90] sm:$0xff] }
  0x2b   : > { %233 = vst [vmem:[%s206_s9 + $0x20] sm:$0xff] %v232_v4  ;;  %235 = vst [vmem:[%s206_s9 + $0x28] sm:$0xff] %v234_v5  ;;  %v238_v7 = vld [vmem:[%s2190_s11 + $0x98] sm:$0xff]  ;;  %v240_v8 = vld [vmem:[%s2190_s11 + $0xc0] sm:$0xff] }
  0x2c   : > { %237 = vst [vmem:[%s206_s9 + $0x30] sm:$0xff] %v236_v6  ;;  %239 = vst [vmem:[%s206_s9 + $0x38] sm:$0xff] %v238_v7  ;;  %v242_v9 = vld [vmem:[%s2190_s11 + $0xc8] sm:$0xff]  ;;  %v244_v10 = vld [vmem:[%s2190_s11 + $0xf0] sm:$0xff] }
  0x2d   : > { %241 = vst [vmem:[%s206_s9 + $0x40] sm:$0xff] %v240_v8  ;;  %v246_v11 = vld [vmem:[%s2190_s11 + $0xf8] sm:$0xff]  ;;  %243 = vst [vmem:[%s206_s9 + $0x48] sm:$0xff] %v242_v9  ;;  %v248_v12 = vld [vmem:[%s2190_s11 + $0x120] sm:$0xff] }
  0x2e   : > { %245 = vst [vmem:[%s206_s9 + $0x50] sm:$0xff] %v244_v10  ;;  %247 = vst [vmem:[%s206_s9 + $0x58] sm:$0xff] %v246_v11  ;;  %v250_v13 = vld [vmem:[%s2190_s11 + $0x128] sm:$0xff]  ;;  %v252_v14 = vld [vmem:[%s2190_s11 + $0x150] sm:$0xff] }
  0x2f   : > { %249 = vst [vmem:[%s206_s9 + $0x60] sm:$0xff] %v248_v12  ;;  %251 = vst [vmem:[%s206_s9 + $0x68] sm:$0xff] %v250_v13  ;;  %v254_v15 = vld [vmem:[%s2190_s11 + $0x158] sm:$0xff] }
  0x30   : > { %253 = vst [vmem:[%s206_s9 + $0x70] sm:$0xff] %v252_v14  ;;  %255 = vst [vmem:[%s206_s9 + $0x78] sm:$0xff] %v254_v15 }
  0x31 PF: > { %261 = sbr.rel (!%p2164_p9) target bundleno = 65 (0x41), region = 55  ;;  %s263_s27 = sand.u32 (%p2164_p9), 1, %s2025_s19  }
  0x32   : > { %s1701_s7 = sshll.u32 (%p2164_p9), %s2045_s24, 2  ;;  %s1700_s8 = sshll.u32 (%p2164_p9), %s263_s27, 7 }
  0x33   : > { %s1619_s10 = smul.u32 (%p2164_p9), 96, %s2049_s25  ;;  %s265_s15 = scalar_lea.vmem (%p2164_p9), [#allocation3], %s1700_s8 }
  0x35   : > { %s1620_s12 = sadd.s32 (%p2164_p9), %s1701_s7, %s1619_s10 }
  0x36   : > { %s1702_s13 = sshll.u32 (%p2164_p9), %s1620_s12, 2 }
  0x37   : > { %s2216_s0 = scalar_lea.vmem (%p2164_p9), %s2707_s1, %s1702_s13 }
  0x38   : > { %v1703_v16 = vld [vmem:[%s2216_s0 + $0x10] sm:$0xff]  ;;  %v1704_v17 = vld [vmem:[%s2216_s0 + $0x18] sm:$0xff]  ;;  %v1705_v18 = vld [vmem:[%s2216_s0 + $0x40] sm:$0xff] }
  0x39   : > { %285 = vst [vmem:[%s265_s15] sm:$0xff] %v1703_v16  ;;  %287 = vst [vmem:[%s265_s15 + $0x8] sm:$0xff] %v1704_v17  ;;  %v1706_v19 = vld [vmem:[%s2216_s0 + $0x48] sm:$0xff]  ;;  %v1707_v20 = vld [vmem:[%s2216_s0 + $0x70] sm:$0xff] }
  0x3a   : > { %289 = vst [vmem:[%s265_s15 + $0x10] sm:$0xff] %v1705_v18  ;;  %v1708_v21 = vld [vmem:[%s2216_s0 + $0x78] sm:$0xff]  ;;  %291 = vst [vmem:[%s265_s15 + $0x18] sm:$0xff] %v1706_v19  ;;  %v1709_v22 = vld [vmem:[%s2216_s0 + $0xa0] sm:$0xff] }
  0x3b   : > { %293 = vst [vmem:[%s265_s15 + $0x20] sm:$0xff] %v1707_v20  ;;  %295 = vst [vmem:[%s265_s15 + $0x28] sm:$0xff] %v1708_v21  ;;  %v1710_v23 = vld [vmem:[%s2216_s0 + $0xa8] sm:$0xff]  ;;  %v1711_v24 = vld [vmem:[%s2216_s0 + $0xd0] sm:$0xff] }
  0x3c   : > { %297 = vst [vmem:[%s265_s15 + $0x30] sm:$0xff] %v1709_v22  ;;  %299 = vst [vmem:[%s265_s15 + $0x38] sm:$0xff] %v1710_v23  ;;  %v1712_v25 = vld [vmem:[%s2216_s0 + $0xd8] sm:$0xff]  ;;  %v1713_v26 = vld [vmem:[%s2216_s0 + $0x100] sm:$0xff] }
  0x3d   : > { %301 = vst [vmem:[%s265_s15 + $0x40] sm:$0xff] %v1711_v24  ;;  %v1714_v27 = vld [vmem:[%s2216_s0 + $0x108] sm:$0xff]  ;;  %303 = vst [vmem:[%s265_s15 + $0x48] sm:$0xff] %v1712_v25  ;;  %v1715_v28 = vld [vmem:[%s2216_s0 + $0x130] sm:$0xff] }
  0x3e   : > { %305 = vst [vmem:[%s265_s15 + $0x50] sm:$0xff] %v1713_v26  ;;  %307 = vst [vmem:[%s265_s15 + $0x58] sm:$0xff] %v1714_v27  ;;  %v1716_v29 = vld [vmem:[%s2216_s0 + $0x138] sm:$0xff]  ;;  %v1717_v30 = vld [vmem:[%s2216_s0 + $0x160] sm:$0xff] }
  0x3f   : > { %309 = vst [vmem:[%s265_s15 + $0x60] sm:$0xff] %v1715_v28  ;;  %311 = vst [vmem:[%s265_s15 + $0x68] sm:$0xff] %v1716_v29  ;;  %v1718_v31 = vld [vmem:[%s2216_s0 + $0x168] sm:$0xff] }
  0x40   : > { %313 = vst [vmem:[%s265_s15 + $0x70] sm:$0xff] %v1717_v30  ;;  %315 = vst [vmem:[%s265_s15 + $0x78] sm:$0xff] %v1718_v31 }
  0x41 PF: > { %p1719_p12 = scmp.ge.s32.totalorder %s2053_s26, 1  ;;  %p320_p13 = scmp.lt.s32.totalorder %s2053_s26, 5 }
  0x43   : > { %p321_p0 = pnand %p1719_p12, %p320_p13 }
  0x44   : > { %s327_s11 = sand.u32 (!%p321_p0), 1, %s2029_s20   ;;  %s334_s0 = sand.u32 (!%p321_p0), 1, %s2021_s18   ;;  %v2056_v48 = vmov (!%p321_p0), 0   ;;  %vm497_vm0 = vcmask (!%p321_p0), 982016   ;;  %v1251_v55 = vld [vmem:[%s2709_s3 + $0x8] sm:$0xff] (!%p321_p0)  ;;  %v1250_v56 = vld [vmem:[%s2709_s3] sm:$0xff] (!%p321_p0) }
  0x45   : > { %324 = sbr.rel (%p321_p0) target bundleno = 548 (0x224), region = 78  ;;  %s1720_s9 = sshll.u32 (!%p321_p0), %s327_s11, 7  ;;  %641 = vmatprep.mubr.bf16.mxu0 (!%p321_p0), %v2056_v48  ;;  %714 = vmatprep.mubr.bf16.mxu1 (!%p321_p0), %v2056_v48  ;;  %v1252_v60 = vld [vmem:[%s2709_s3 + $0x10] sm:$0xff] (!%p321_p0)  ;;  %v1253_v61 = vld [vmem:[%s2709_s3 + $0x18] sm:$0xff] (!%p321_p0)  ;;  %v1254_v2 = vld [vmem:[%s2709_s3 + $0x20] sm:$0xff] (!%p321_p0)  ;;  %vm596_vm1 = vcmask (!%p321_p0), 523264  }
  0x46   : > { %s2239_s27 = scalar_lea.vmem (!%p321_p0), [#allocation2], %s1720_s9  ;;  %s1721_s7 = sshll.u32 (!%p321_p0), %s334_s0, 7  ;;  %1941 = vset.pattern.permute.xlu0 (!%p321_p0), %v2056_v48  ;;  %1942 = vset.pattern.permute.xlu1 (!%p321_p0), %v2056_v48  ;;  %v1255_v3 = vld [vmem:[%s2709_s3 + $0x28] sm:$0xff] (!%p321_p0)  ;;  %v1256_v7 = vld [vmem:[%s2709_s3 + $0x30] sm:$0xff] (!%p321_p0)  ;;  %v1257_v8 = vld [vmem:[%s2709_s3 + $0x38] sm:$0xff] (!%p321_p0)  ;;  %vm981_vm2 = vcmask (!%p321_p0), 916480  }
  0x47   : > { %v2242_v32 = vld [vmem:[%s2239_s27 + $0xc] ss:$16 sps:$4 sm:$0xff] (!%p321_p0)   ;;  %v2246_v33 = vld [vmem:[%s2239_s27 + $0x4] ss:$16 sps:$4 sm:$0xff] (!%p321_p0)   ;;  %s2055_s8 = smov (!%p321_p0), 120   ;;  %s2255_s10 = scalar_lea.vmem (!%p321_p0), [#allocation3], %s1721_s7 }
  0x48   : > { %471 = vrot.lane.b32.xlu1 (!%p321_p0), %v2242_v32, %s2055_s8  ;;  %v2251_v34 = vld [vmem:[%s2239_s27 + $0x8] ss:$16 sps:$4 sm:$0xff] (!%p321_p0)   ;;  %467 = vrot.lane.b32.xlu0 (!%p321_p0), %v2246_v33, %s2055_s8  ;;  %v1947_v35 = vld [vmem:[%s2255_s10] ss:$16 sps:$4 sm:$0xff] (!%p321_p0)   ;;  %s2057_s18 = smov (!%p321_p0), 112   ;;  %s1722_s7 = sshll.u32 (!%p321_p0), %s327_s11, 8 }
  0x49   : > { %v2260_v36 = vld [vmem:[%s2239_s27 + $0x24] ss:$16 sps:$4 sm:$0xff] (!%p321_p0)   ;;  %v2265_v37 = vld [vmem:[%s2239_s27] ss:$16 sps:$4 sm:$0xff] (!%p321_p0)   ;;  %v2270_v38 = vld [vmem:[%s2239_s27 + $0x2c] ss:$16 sps:$4 sm:$0xff] (!%p321_p0)  }
  0x4a   : > { %v2275_v39 = vld [vmem:[%s2239_s27 + $0x28] ss:$16 sps:$4 sm:$0xff] (!%p321_p0)   ;;  %v2278_v40 = vld [vmem:[%s2239_s27 + $0x20] ss:$16 sps:$4 sm:$0xff] (!%p321_p0)   ;;  %v2289_v43 = vld [vmem:[%s2239_s27 + $0x44] ss:$16 sps:$4 sm:$0xff] (!%p321_p0)  }
  0x4b   : > { %v1956_v41 = vld [vmem:[%s2255_s10 + $0x20] ss:$16 sps:$4 sm:$0xff] (!%p321_p0)   ;;  %v2286_v42 = vld [vmem:[%s2239_s27 + $0x48] ss:$16 sps:$4 sm:$0xff] (!%p321_p0)   ;;  %v2300_v45 = vld [vmem:[%s2239_s27 + $0x4c] ss:$16 sps:$4 sm:$0xff] (!%p321_p0)  }
  0x4c   : > { %542 = vrot.lane.b32.xlu1 %v1947_v35, %s2055_s8  ;;  %469 = vrot.lane.b32.xlu0 %v2251_v34, %s2055_s8  ;;  %v1961_v44 = vld [vmem:[%s2255_s10 + $0x40] ss:$16 sps:$4 sm:$0xff]   ;;  %v2304_v46 = vld [vmem:[%s2239_s27 + $0x64] ss:$16 sps:$4 sm:$0xff]   ;;  %s2548_s20 = scalar_lea.vmem [#allocation4], %s1722_s7  ;;  %s1796_s11 = sshll.u32 (%p2171_p10), %s2037_s22, 2 }
  0x4d   : > { %v2309_v47 = vld [vmem:[%s2239_s27 + $0x40] ss:$16 sps:$4 sm:$0xff]   ;;  %v2316_v49 = vld [vmem:[%s2239_s27 + $0x6c] ss:$16 sps:$4 sm:$0xff]   ;;  %v2322_v50 = vld [vmem:[%s2239_s27 + $0x68] ss:$16 sps:$4 sm:$0xff]  }
  0x4e   : > { %v2328_v51 = vld [vmem:[%s2239_s27 + $0x60] ss:$16 sps:$4 sm:$0xff]   ;;  %v1363_v15 = vld [vmem:[%s2710_s4 + $0x8] sm:$0xff]  ;;  %v1365_v21 = vld [vmem:[%s2710_s4 + $0x18] sm:$0xff] }
  0x4f   : > { %v1970_v52 = vld [vmem:[%s2255_s10 + $0x60] ss:$16 sps:$4 sm:$0xff]   ;;  %v1367_v27 = vld [vmem:[%s2710_s4 + $0x28] sm:$0xff] }
  0x50   : > { %475 = vrot.lane.b32.xlu1 %v2260_v36, %s2055_s8  ;;  %465 = vrot.lane.b32.xlu0 %v2265_v37, %s2055_s8  ;;  %v1362_v13 = vld [vmem:[%s2710_s4] sm:$0xff]  ;;  %v1364_v19 = vld [vmem:[%s2710_s4 + $0x10] sm:$0xff] }
  0x51   : > { %v1366_v24 = vld [vmem:[%s2710_s4 + $0x20] sm:$0xff]  ;;  %v1368_v30 = vld [vmem:[%s2710_s4 + $0x30] sm:$0xff] }
  0x54   : > { %479 = vrot.lane.b32.xlu1 %v2270_v38, %s2055_s8  ;;  %477 = vrot.lane.b32.xlu0 %v2275_v39, %s2055_s8 }
  0x58   : > { %473 = vrot.lane.b32.xlu1 %v2278_v40, %s2055_s8  ;;  %544 = vrot.lane.b32.xlu0 %v1956_v41, %s2055_s8 }
  0x5c   : > { %485 = vrot.lane.b32.xlu1 %v2286_v42, %s2055_s8  ;;  %483 = vrot.lane.b32.xlu0 %v2289_v43, %s2055_s8 }
  0x60   : > { %546 = vrot.lane.b32.xlu1 %v1961_v44, %s2055_s8  ;;  %487 = vrot.lane.b32.xlu0 %v2300_v45, %s2055_s8 }
  0x64   : > { %491 = vrot.lane.b32.xlu1 %v2304_v46, %s2055_s8  ;;  %481 = vrot.lane.b32.xlu0 %v2309_v47, %s2055_s8 }
  0x68   : > { %495 = vrot.lane.b32.xlu1 %v2316_v49, %s2055_s8  ;;  %493 = vrot.lane.b32.xlu0 %v2322_v50, %s2055_s8 }
  0x6c   : > { %489 = vrot.lane.b32.xlu1 %v2328_v51, %s2055_s8  ;;  %548 = vrot.lane.b32.xlu0 %v1970_v52, %s2055_s8  ;;  %s1797_s8 = sshll.u32 (%p2171_p10), %s2041_s23, 6 }
  0x6d   : > { %s1515_s16 = sadd.s32 (%p2171_p10), %s1797_s8, %s1796_s11 }
  0x6e   : > { %s1798_s10 = sshll.u32 (%p2171_p10), %s1515_s16, 3 }
  0x6f   : > { %s2622_s13 = scalar_lea.vmem (%p2171_p10), %s2711_s5, %s1798_s10 }
  0x70   : > { %953 = vrot.lane.b32.xlu1 %v2251_v34, %s2057_s18  ;;  %951 = vrot.lane.b32.xlu0 %v2246_v33, %s2057_s18 }
  0x74   : > { %1006 = vrot.lane.b32.xlu1 %v1947_v35, %s2057_s18  ;;  %955 = vrot.lane.b32.xlu0 %v2242_v32, %s2057_s18  ;;  %v1369_v35 = vld [vmem:[%s2710_s4 + $0x38] sm:$0xff] }
  0x78   : > { %959 = vrot.lane.b32.xlu1 %v2260_v36, %s2057_s18  ;;  %949 = vrot.lane.b32.xlu0 %v2265_v37, %s2057_s18 }
  0x7c   : > { %963 = vrot.lane.b32.xlu1 %v2270_v38, %s2057_s18  ;;  %961 = vrot.lane.b32.xlu0 %v2275_v39, %s2057_s18 }
  0x80   : > { %957 = vrot.lane.b32.xlu1 %v2278_v40, %s2057_s18  ;;  %1008 = vrot.lane.b32.xlu0 %v1956_v41, %s2057_s18 }
  0x84   : > { %969 = vrot.lane.b32.xlu1 %v2286_v42, %s2057_s18  ;;  %967 = vrot.lane.b32.xlu0 %v2289_v43, %s2057_s18 }
  0x88   : > { %1010 = vrot.lane.b32.xlu1 %v1961_v44, %s2057_s18  ;;  %971 = vrot.lane.b32.xlu0 %v2300_v45, %s2057_s18 }
  0x8c   : > { %975 = vrot.lane.b32.xlu1 %v2304_v46, %s2057_s18  ;;  %965 = vrot.lane.b32.xlu0 %v2309_v47, %s2057_s18 }
  0x90   : > { %979 = vrot.lane.b32.xlu1 %v2316_v49, %s2057_s18  ;;  %977 = vrot.lane.b32.xlu0 %v2322_v50, %s2057_s18 }
  0x94   : > { %973 = vrot.lane.b32.xlu1 %v2328_v51, %s2057_s18  ;;  %1012 = vrot.lane.b32.xlu0 %v1970_v52, %s2057_s18 }
  0x98   : > { %1265 = vperm.xlu1 %1942, %v1251_v55   ;;  %1260 = vperm.xlu0 %1941, %v1250_v56   ;;  %v1971_v56 = vld [vmem:[%s2708_s2 + $0x20] sm:$0xff]  }
  0x9c   : > { %1270 = vperm.xlu1 %1942, %v1252_v60   ;;  %1275 = vperm.xlu0 %1941, %v1253_v61   ;;  %v1972_v61 = vld [vmem:[%s2708_s2 + $0x28] sm:$0xff]  }
  0xa0   : > { %1280 = vperm.xlu1 %1942, %v1254_v2   ;;  %1285 = vperm.xlu0 %1941, %v1255_v3  }
  0xa4   : > { %1290 = vperm.xlu1 %1942, %v1256_v7   ;;  %1295 = vperm.xlu0 %1941, %v1257_v8  }
  0xa8   : > { %1372 = vperm.xlu1 %1942, %v1362_v13   ;;  %1377 = vperm.xlu0 %1941, %v1363_v15  }
  0xac   : > { %1382 = vperm.xlu1 %1942, %v1364_v19   ;;  %1387 = vperm.xlu0 %1941, %v1365_v21   ;;  %v1978_v21 = vld [vmem:[%s2708_s2 + $0x18] sm:$0xff]  }
  0xb0   : > { %1392 = vperm.xlu1 %1942, %v1366_v24   ;;  %1397 = vperm.xlu0 %1941, %v1367_v27   ;;  %v1981_v24 = vld [vmem:[%s2708_s2 + $0x50] sm:$0xff]  }
  0xb4   : > { %1402 = vperm.xlu1 %1942, %v1368_v30   ;;  %1407 = vperm.xlu0 %1941, %v1369_v35  }
  0xba   : > { %v472_v53 = vpop.permute.xlu1 %471  ;;  %v468_v54 = vpop.permute.xlu0 %467 }
  0xbe   : > { %v543_v57 = vpop.permute.xlu1 %542  ;;  %v470_v58 = vpop.permute.xlu0 %469 }
  0xbf   : > { %v553_v59 = vsel %vm497_vm0, %v472_v53, %v543_v57  ;;  %v499_v62 = vsel %vm497_vm0, %v468_v54, %v470_v58  ;;  %v500_v63 = vsel %vm497_vm0, %v470_v58, %v472_v53 }
  0xc0   : > { %682 = vmatprep.subr.bf16.mxu1 %v553_v59  ;;  %609 = vmatprep.subr.bf16.mxu0 %v499_v62 }
  0xc1   : > { %683 = vmatpush1.bf16.msra.mxu1 %v500_v63  ;;  %v1975_v63 = vld [vmem:[%s2708_s2] sm:$0xff]  }
  0xc2   : > { %v476_v0 = vpop.permute.xlu1 %475  ;;  %v466_v1 = vpop.permute.xlu0 %465 }
  0xc3   : > { %v498_v4 = vsel %vm497_vm0, %v466_v1, %v468_v54 }
  0xc4   : > { %610 = vmatpush1.bf16.msra.mxu0 %v498_v4 }
  0xc6   : > { %v480_v5 = vpop.permute.xlu1 %479  ;;  %v478_v6 = vpop.permute.xlu0 %477 }
  0xc7   : > { %v502_v9 = vsel %vm497_vm0, %v476_v0, %v478_v6  ;;  %v503_v16 = vsel %vm497_vm0, %v478_v6, %v480_v5 }
  0xc8   : > { %611 = vmatprep.subr.bf16.mxu0 %v502_v9 }
  0xca   : > { %v474_v10 = vpop.permute.xlu1 %473  ;;  %v545_v11 = vpop.permute.xlu0 %544 }
  0xcb   : > { %v501_v12 = vsel %vm497_vm0, %v474_v10, %v476_v0  ;;  %v557_v14 = vsel %vm497_vm0, %v480_v5, %v545_v11  ;;  %v1976_v10 = vld [vmem:[%s2708_s2 + $0x8] sm:$0xff]  }
  0xcc   : > { %612 = vmatpush1.bf16.msra.mxu0 %v501_v12  ;;  %684 = vmatprep.subr.bf16.mxu1 %v557_v14 }
  0xcd   : > { %685 = vmatpush1.bf16.msra.mxu1 %v503_v16 }
  0xce   : > { %v486_v17 = vpop.permute.xlu1 %485  ;;  %v484_v18 = vpop.permute.xlu0 %483 }
  0xcf   : > { %v505_v20 = vsel %vm497_vm0, %v484_v18, %v486_v17 }
  0xd0   : > { %613 = vmatprep.subr.bf16.mxu0 %v505_v20  ;;  %v1977_v20 = vld [vmem:[%s2708_s2 + $0x10] sm:$0xff]  }
  0xd2   : > { %v547_v22 = vpop.permute.xlu1 %546  ;;  %v488_v23 = vpop.permute.xlu0 %487 }
  0xd3   : > { %v561_v25 = vsel %vm497_vm0, %v488_v23, %v547_v22  ;;  %v506_v26 = vsel %vm497_vm0, %v486_v17, %v488_v23  ;;  %v1979_v22 = vld [vmem:[%s2708_s2 + $0x40] sm:$0xff]   ;;  %v1980_v23 = vld [vmem:[%s2708_s2 + $0x48] sm:$0xff]  }
  0xd4   : > { %686 = vmatprep.subr.bf16.mxu1 %v561_v25  ;;  %v1982_v25 = vld [vmem:[%s2708_s2 + $0x58] sm:$0xff]  }
  0xd5   : > { %687 = vmatpush1.bf16.msra.mxu1 %v506_v26 }
  0xd6   : > { %v492_v28 = vpop.permute.xlu1 %491  ;;  %v482_v29 = vpop.permute.xlu0 %481 }
  0xd7   : > { %v504_v31 = vsel %vm497_vm0, %v482_v29, %v484_v18 }
  0xd8   : > { %614 = vmatpush1.bf16.msra.mxu0 %v504_v31 }
  0xda   : > { %v496_v41 = vpop.permute.xlu1 %495  ;;  %v494_v44 = vpop.permute.xlu0 %493 }
  0xdb   : > { %v508_v52 = vsel %vm497_vm0, %v492_v28, %v494_v44  ;;  %v509_v58 = vsel %vm497_vm0, %v494_v44, %v496_v41 }
  0xdc   : > { %615 = vmatprep.subr.bf16.mxu0 %v508_v52 }
  0xde   : > { %v490_v53 = vpop.permute.xlu1 %489  ;;  %v549_v54 = vpop.permute.xlu0 %548 }
  0xdf   : > { %v507_v55 = vsel %vm497_vm0, %v490_v53, %v492_v28  ;;  %v565_v57 = vsel %vm497_vm0, %v496_v41, %v549_v54 }
  0xe0   : > { %616 = vmatpush1.bf16.msra.mxu0 %v507_v55  ;;  %688 = vmatprep.subr.bf16.mxu1 %v565_v57 }
  0xe1   : > { %803 = vmatprep.subr.bf16.mxu0 %v2246_v33  ;;  %689 = vmatpush1.bf16.msra.mxu1 %v509_v58 }
  0xe2   : > { %v2420_v59 = vpop.permute.xlu1 %953  ;;  %876 = vmatprep.subr.bf16.mxu1 %v2242_v32  ;;  %v952_v60 = vpop.permute.xlu0 %951 }
  0xe3   : > { %1755 = vmatmul.mubr.msk.bf16.vlgmr.msra.gmra.mrb[0].mxu0 %vm596_vm1, %v1971_v56 }
  0xe4   : > { %804 = vmatpush1.bf16.msra.mxu0 %v2265_v37  ;;  %651 = vmatprep.mubr.bf16.mxu0 %v2056_v48 }
  0xe5   : > { %1759 = vmatmul.mubr.msk.bf16.vlgmr.msra.gmra.mrb[0].mxu1 %vm596_vm1, %v1971_v56  ;;  %805 = vmatprep.subr.bf16.mxu0 %v2260_v36  ;;  %v983_v36 = vsel %vm981_vm2, %v952_v60, %v2420_v59 }
  0xe6   : > { %877 = vmatpush1.bf16.msra.mxu1 %v2251_v34  ;;  %724 = vmatprep.mubr.bf16.mxu1 %v2056_v48  ;;  %v1007_v33 = vpop.permute.xlu1 %1006  ;;  %v956_v32 = vpop.permute.xlu0 %955 }
  0xe7   : > { %878 = vmatprep.subr.bf16.mxu1 %v2270_v38  ;;  %v984_v6 = vsel %vm981_vm2, %v2420_v59, %v956_v32 }
  0xe8   : > { %806 = vmatpush1.bf16.msra.mxu0 %v2278_v40 }
  0xe9   : > { %807 = vmatprep.subr.bf16.mxu0 %v2289_v43  ;;  %v1017_v43 = vsel %vm981_vm2, %v956_v32, %v1007_v33 }
  0xea   : > { %879 = vmatpush1.bf16.msra.mxu1 %v2275_v39  ;;  %v960_v37 = vpop.permute.xlu1 %959  ;;  %v950_v34 = vpop.permute.xlu0 %949  ;;  %v1973_v39 = vld [vmem:[%s2708_s2 + $0x30] sm:$0xff]  }
  0xeb   : > { %1756 = vmatmul.mubr.msk.bf16.gmra.mrb[4].mxu0 %vm596_vm1, %v1972_v61  ;;  %880 = vmatprep.subr.bf16.mxu1 %v2300_v45  ;;  %v982_v2 = vsel %vm981_vm2, %v950_v34, %v952_v60 }
  0xec   : > { %661 = vmatprep.mubr.bf16.mxu0 %v2056_v48  ;;  %808 = vmatpush1.bf16.msra.mxu0 %v2309_v47  ;;  %v1974_v47 = vld [vmem:[%s2708_s2 + $0x38] sm:$0xff]  }
  0xed   : > { %1760 = vmatmul.mubr.msk.bf16.gmra.mrb[4].mxu1 %vm596_vm1, %v1972_v61  ;;  %809 = vmatprep.subr.bf16.mxu0 %v2304_v46 }
  0xee   : > { %734 = vmatprep.mubr.bf16.mxu1 %v2056_v48  ;;  %881 = vmatpush1.bf16.msra.mxu1 %v2286_v42  ;;  %v964_v38 = vpop.permute.xlu1 %963  ;;  %v962_v40 = vpop.permute.xlu0 %961 }
  0xef   : > { %882 = vmatprep.subr.bf16.mxu1 %v2316_v49  ;;  %v986_v1 = vsel %vm981_vm2, %v960_v37, %v962_v40  ;;  %v987_v8 = vsel %vm981_vm2, %v962_v40, %v964_v38 }
  0xf0   : > { %810 = vmatpush1.bf16.msra.mxu0 %v2328_v51 }
  0xf1   : > { %1072 = vmatprep.subr.bf16.mxu0 %v983_v36 }
  0xf2   : > { %883 = vmatpush1.bf16.msra.mxu1 %v2322_v50  ;;  %v958_v45 = vpop.permute.xlu1 %957  ;;  %v1009_v42 = vpop.permute.xlu0 %1008 }
  0xf3   : > { %1757 = vmatmul.mubr.msk.bf16.gmra.mrb[8].mxu0 %vm596_vm1, %v1973_v39  ;;  %1145 = vmatprep.subr.bf16.mxu1 %v1017_v43  ;;  %v1021_v4 = vsel %vm981_vm2, %v964_v38, %v1009_v42  ;;  %v985_v9 = vsel %vm981_vm2, %v958_v45, %v960_v37 }
  0xf4   : > { %671 = vmatprep.mubr.bf16.mxu0 %v2056_v48 }
  0xf5   : > { %1761 = vmatmul.mubr.msk.bf16.gmra.mrb[8].mxu1 %vm596_vm1, %v1973_v39 }
  0xf6   : > { %744 = vmatprep.mubr.bf16.mxu1 %v2056_v48  ;;  %v970_v46 = vpop.permute.xlu1 %969  ;;  %v968_v49 = vpop.permute.xlu0 %967 }
  0xf7   : > { %v989_v7 = vsel %vm981_vm2, %v968_v49, %v970_v46 }
  0xfa   : > { %v1011_v51 = vpop.permute.xlu1 %1010  ;;  %v972_v50 = vpop.permute.xlu0 %971 }
  0xfb   : > { %1758 = vmatmul.mubr.msk.bf16.gmra.mrb[12].mxu0 %vm596_vm1, %v1974_v47  ;;  %v1025_v11 = vsel %vm981_vm2, %v972_v50, %v1011_v51  ;;  %v990_v16 = vsel %vm981_vm2, %v970_v46, %v972_v50 }
  0xfc   : > { %835 = vmatprep.mubr.bf16.mxu0 %v2056_v48 }
  0xfd   : > { %1762 = vmatmul.mubr.msk.bf16.gmra.mrb[12].mxu1 %vm596_vm1, %v1974_v47 }
  0xfe   : > { %908 = vmatprep.mubr.bf16.mxu1 %v2056_v48  ;;  %v976_v62 = vpop.permute.xlu1 %975  ;;  %v966_v0 = vpop.permute.xlu0 %965 }
  0xff   : > { %v988_v12 = vsel %vm981_vm2, %v966_v0, %v968_v49 }
 0x102   : > { %v978_v3 = vpop.permute.xlu0 %977  ;;  %v980_v5 = vpop.permute.xlu1 %979 }
 0x103   : > { %1767 = vmatmul.mubr.msk.bf16.vlgmr.msra.gmra.mrb[0].mxu0 %vm596_vm1, %v1975_v63  ;;  %v992_v15 = vsel %vm981_vm2, %v976_v62, %v978_v3  ;;  %v993_v19 = vsel %vm981_vm2, %v978_v3, %v980_v5 }
 0x104   : > { %1073 = vmatpush1.bf16.msra.mxu0 %v982_v2  ;;  %845 = vmatprep.mubr.bf16.mxu0 %v2056_v48 }
 0x105   : > { %1771 = vmatmul.mubr.msk.bf16.vlgmr.msra.gmra.mrb[0].mxu1 %vm596_vm1, %v1975_v63  ;;  %1074 = vmatprep.subr.bf16.mxu0 %v986_v1 }
 0x106   : > { %1146 = vmatpush1.bf16.msra.mxu1 %v984_v6  ;;  %918 = vmatprep.mubr.bf16.mxu1 %v2056_v48  ;;  %v1013_v13 = vpop.permute.xlu0 %1012  ;;  %v974_v14 = vpop.permute.xlu1 %973 }
 0x107   : > { %1147 = vmatprep.subr.bf16.mxu1 %v1021_v4  ;;  %v1029_v17 = vsel %vm981_vm2, %v980_v5, %v1013_v13  ;;  %v991_v18 = vsel %vm981_vm2, %v974_v14, %v976_v62 }
 0x108   : > { %1075 = vmatpush1.bf16.msra.mxu0 %v985_v9 }
 0x109   : > { %1076 = vmatprep.subr.bf16.mxu0 %v989_v7 }
 0x10a   : > { %1148 = vmatpush1.bf16.msra.mxu1 %v987_v8 }
 0x10b   : > { %1768 = vmatmul.mubr.msk.bf16.gmra.mrb[4].mxu0 %vm596_vm1, %v1976_v10  ;;  %1149 = vmatprep.subr.bf16.mxu1 %v1025_v11 }
 0x10c   : > { %1077 = vmatpush1.bf16.msra.mxu0 %v988_v12  ;;  %855 = vmatprep.mubr.bf16.mxu0 %v2056_v48 }
 0x10d   : > { %1772 = vmatmul.mubr.msk.bf16.gmra.mrb[4].mxu1 %vm596_vm1, %v1976_v10  ;;  %1078 = vmatprep.subr.bf16.mxu0 %v992_v15 }
 0x10e   : > { %1150 = vmatpush1.bf16.msra.mxu1 %v990_v16  ;;  %928 = vmatprep.mubr.bf16.mxu1 %v2056_v48 }
 0x10f   : > { %1151 = vmatprep.subr.bf16.mxu1 %v1029_v17 }
 0x110   : > { %1079 = vmatpush1.bf16.msra.mxu0 %v991_v18 }
 0x112   : > { %1152 = vmatpush1.bf16.msra.mxu1 %v993_v19 }
 0x113   : > { %1769 = vmatmul.mubr.msk.bf16.gmra.mrb[8].mxu0 %vm596_vm1, %v1977_v20 }
 0x114   : > { %865 = vmatprep.mubr.bf16.mxu0 %v2056_v48 }
 0x115   : > { %1773 = vmatmul.mubr.msk.bf16.gmra.mrb[8].mxu1 %vm596_vm1, %v1977_v20 }
 0x116   : > { %938 = vmatprep.mubr.bf16.mxu1 %v2056_v48 }
 0x117   : > { %v1266_v26 = vpop.permute.xlu1 %1265  ;;  %v1261_v27 = vpop.permute.xlu0 %1260 }
 0x11b   : > { %1770 = vmatmul.mubr.msk.bf16.gmra.mrb[12].mxu0 %vm596_vm1, %v1978_v21  ;;  %v2534_v28 = vpop.permute.xlu1 %1270  ;;  %v2536_v29 = vpop.permute.xlu0 %1275 }
 0x11c   : > { %1104 = vmatprep.mubr.bf16.mxu0 %v2056_v48 }
 0x11d   : > { %1774 = vmatmul.mubr.msk.bf16.gmra.mrb[12].mxu1 %vm596_vm1, %v1978_v21 }
 0x11e   : > { %1177 = vmatprep.mubr.bf16.mxu1 %v2056_v48 }
 0x11f   : > { %v2538_v30 = vpop.permute.xlu1 %1280  ;;  %v2540_v31 = vpop.permute.xlu0 %1285 }
 0x123   : > { %1787 = vmatmul.mubr.msk.bf16.vlgmr.msra.gmra.mrb[0].mxu0 %vm596_vm1, %v1979_v22  ;;  %v2542_v35 = vpop.permute.xlu1 %1290 }
 0x124   : > { %1114 = vmatprep.mubr.bf16.mxu0 %v2056_v48 }
 0x125   : > { %1791 = vmatmul.mubr.msk.bf16.vlgmr.msra.gmra.mrb[0].mxu1 %vm596_vm1, %v1979_v22 }
 0x126   : > { %1187 = vmatprep.mubr.bf16.mxu1 %v2056_v48 }
 0x127   : > { %v1373_v44 = vpop.permute.xlu1 %1372 }
 0x12b   : > { %1788 = vmatmul.mubr.msk.bf16.gmra.mrb[4].mxu0 %vm596_vm1, %v1980_v23  ;;  %v1383_v0 = vpop.permute.xlu1 %1382 }
 0x12c   : > { %1124 = vmatprep.mubr.bf16.mxu0 %v2056_v48 }
 0x12d   : > { %1792 = vmatmul.mubr.msk.bf16.gmra.mrb[4].mxu1 %vm596_vm1, %v1980_v23 }
 0x12e   : > { %1197 = vmatprep.mubr.bf16.mxu1 %v2056_v48 }
 0x133   : > { %1789 = vmatmul.mubr.msk.bf16.gmra.mrb[8].mxu0 %vm596_vm1, %v1981_v24 }
 0x134   : > { %1134 = vmatprep.mubr.bf16.mxu0 %v2056_v48 }
 0x135   : > { %1793 = vmatmul.mubr.msk.bf16.gmra.mrb[8].mxu1 %vm596_vm1, %v1981_v24 }
 0x136   : > { %1207 = vmatprep.mubr.bf16.mxu1 %v2056_v48  ;;  %v2544_v48 = vpop.permute.xlu0 %1295 }
 0x13a   : > { %v1378_v36 = vpop.permute.xlu0 %1377 }
 0x13b   : > { %1790 = vmatmul.mubr.msk.bf16.gmra.mrb[12].mxu0 %vm596_vm1, %v1982_v25 }
 0x13d   : > { %1794 = vmatmul.mubr.msk.bf16.gmra.mrb[12].mxu1 %vm596_vm1, %v1982_v25 }
 0x13e   : > { %v1388_v18 = vpop.permute.xlu0 %1387 }
 0x1f6   : > { %v1106_v41 = vpop.f32.mrb[0].mxu0 }
 0x1f7   : > { %v1298_v52 = vadd.f32 %v1261_v27, %v1106_v41  ;;  %v1108_v53 = vpop.f32.mrb[1].mxu0 }
 0x1f8   : > { %v1299_v54 = vadd.f32 %v1261_v27, %v1108_v53  ;;  %v1179_v55 = vpop.f32.mrb[0].mxu1  ;;  %v1110_v56 = vpop.f32.mrb[2].mxu0 }
 0x1f9   : > { %vm1330_vm3 = vcmp.ge.f32.partialorder %v1298_v52, 0.0  ;;  %v1410_v57 = vmul.f32 %v1373_v44, %v1298_v52  ;;  %v1300_v58 = vadd.f32 %v1261_v27, %v1179_v55  ;;  %v1302_v59 = vadd.f32 %v1266_v26, %v1110_v56  ;;  %v1181_v60 = vpop.f32.mrb[1].mxu1  ;;  %v1112_v33 = vpop.f32.mrb[3].mxu0 }
 0x1fa   : > { %vm1331_vm4 = vcmp.ge.f32.partialorder %v1299_v54, 0.0  ;;  %v1411_v61 = vmul.f32 %v1373_v44, %v1299_v54  ;;  %v1301_v32 = vadd.f32 %v1261_v27, %v1181_v60  ;;  %v1303_v37 = vadd.f32 %v1266_v26, %v1112_v33  ;;  %v1183_v34 = vpop.f32.mrb[2].mxu1 }
 0x1fb   : > { %v1442_v38 = vsel %vm1330_vm3, %v1298_v52, %v1410_v57  ;;  %vm1332_vm5 = vcmp.ge.f32.partialorder %v1300_v58, 0.0  ;;  %v1412_v39 = vmul.f32 %v1373_v44, %v1300_v58  ;;  %vm1334_vm6 = vcmp.ge.f32.partialorder %v1302_v59, 0.0  ;;  %v1185_v40 = vpop.f32.mrb[3].mxu1 }
 0x1fc   : > { %1474 = vst [vmem:[%s2548_s20] sm:$0xff] %v1442_v38  ;;  %v1443_v43 = vsel %vm1331_vm4, %v1299_v54, %v1411_v61  ;;  %v1414_v45 = vmul.f32 %v1378_v36, %v1302_v59  ;;  %vm1333_vm7 = vcmp.ge.f32.partialorder %v1301_v32, 0.0  ;;  %v1413_v42 = vmul.f32 %v1373_v44, %v1301_v32  ;;  %v1393_v54 = vpop.permute.xlu1 %1392 }
 0x1fd   : > { %1475 = vst [vmem:[%s2548_s20 + $0x8] sm:$0xff] %v1443_v43  ;;  %v1444_v46 = vsel %vm1332_vm5, %v1300_v58, %v1412_v39  ;;  %vm1335_vm8 = vcmp.ge.f32.partialorder %v1303_v37, 0.0  ;;  %v1415_v47 = vmul.f32 %v1378_v36, %v1303_v37  ;;  %v1304_v49 = vadd.f32 %v1266_v26, %v1183_v34 }
 0x1fe   : > { %1476 = vst [vmem:[%s2548_s20 + $0x10] sm:$0xff] %v1444_v46  ;;  %v1446_v51 = vsel %vm1334_vm6, %v1302_v59, %v1414_v45  ;;  %v1445_v50 = vsel %vm1333_vm7, %v1301_v32, %v1413_v42  ;;  %v1305_v62 = vadd.f32 %v1266_v26, %v1185_v40  ;;  %v1116_v63 = vpop.f32.mrb[4].mxu0  ;;  %v1398_v42 = vpop.permute.xlu0 %1397 }
 0x1ff   : > { %1478 = vst [vmem:[%s2548_s20 + $0x20] sm:$0xff] %v1446_v51  ;;  %1477 = vst [vmem:[%s2548_s20 + $0x18] sm:$0xff] %v1445_v50  ;;  %v1447_v1 = vsel %vm1335_vm8, %v1303_v37, %v1415_v47  ;;  %vm1336_vm9 = vcmp.ge.f32.partialorder %v1304_v49, 0.0  ;;  %v1416_v2 = vmul.f32 %v1378_v36, %v1304_v49  ;;  %v1306_v3 = vadd.f32 %v2534_v28, %v1116_v63  ;;  %v1118_v4 = vpop.f32.mrb[5].mxu0 }
 0x200   : > { %1479 = vst [vmem:[%s2548_s20 + $0x28] sm:$0xff] %v1447_v1  ;;  %vm1337_vm10 = vcmp.ge.f32.partialorder %v1305_v62, 0.0  ;;  %v1417_v5 = vmul.f32 %v1378_v36, %v1305_v62  ;;  %v1307_v6 = vadd.f32 %v2534_v28, %v1118_v4  ;;  %v1189_v7 = vpop.f32.mrb[4].mxu1  ;;  %v1120_v8 = vpop.f32.mrb[6].mxu0 }
 0x201   : > { %v1448_v9 = vsel %vm1336_vm9, %v1304_v49, %v1416_v2  ;;  %vm1338_vm11 = vcmp.ge.f32.partialorder %v1306_v3, 0.0  ;;  %v1418_v10 = vmul.f32 %v1383_v0, %v1306_v3  ;;  %v1308_v11 = vadd.f32 %v2534_v28, %v1189_v7  ;;  %v1191_v12 = vpop.f32.mrb[5].mxu1  ;;  %v1122_v13 = vpop.f32.mrb[7].mxu0 }
 0x202   : > { %1480 = vst [vmem:[%s2548_s20 + $0x30] sm:$0xff] %v1448_v9  ;;  %v1449_v14 = vsel %vm1337_vm10, %v1305_v62, %v1417_v5  ;;  %vm1339_vm12 = vcmp.ge.f32.partialorder %v1307_v6, 0.0  ;;  %v1419_v15 = vmul.f32 %v1383_v0, %v1307_v6  ;;  %v1310_v16 = vadd.f32 %v2536_v29, %v1120_v8  ;;  %v1193_v17 = vpop.f32.mrb[6].mxu1 }
 0x203   : > { %1481 = vst [vmem:[%s2548_s20 + $0x38] sm:$0xff] %v1449_v14  ;;  %v1450_v19 = vsel %vm1338_vm11, %v1306_v3, %v1418_v10  ;;  %vm1340_vm13 = vcmp.ge.f32.partialorder %v1308_v11, 0.0  ;;  %v1420_v20 = vmul.f32 %v1383_v0, %v1308_v11  ;;  %v1309_v21 = vadd.f32 %v2534_v28, %v1191_v12  ;;  %v1195_v22 = vpop.f32.mrb[7].mxu1 }
 0x204   : > { %1482 = vst [vmem:[%s2548_s20 + $0x40] sm:$0xff] %v1450_v19  ;;  %v1451_v23 = vsel %vm1339_vm12, %v1307_v6, %v1419_v15  ;;  %vm1342_vm14 = vcmp.ge.f32.partialorder %v1310_v16, 0.0  ;;  %v1422_v24 = vmul.f32 %v1388_v18, %v1310_v16  ;;  %v1311_v25 = vadd.f32 %v2536_v29, %v1122_v13  ;;  %v1403_v6 = vpop.permute.xlu1 %1402 }
 0x205   : > { %1483 = vst [vmem:[%s2548_s20 + $0x48] sm:$0xff] %v1451_v23  ;;  %v1452_v26 = vsel %vm1340_vm13, %v1308_v11, %v1420_v20  ;;  %vm1341_vm15 = vcmp.ge.f32.partialorder %v1309_v21, 0.0  ;;  %v1421_v27 = vmul.f32 %v1383_v0, %v1309_v21  ;;  %v1312_v41 = vadd.f32 %v2536_v29, %v1193_v17 }
 0x206   : > { %1484 = vst [vmem:[%s2548_s20 + $0x50] sm:$0xff] %v1452_v26  ;;  %v1454_v44 = vsel %vm1342_vm14, %v1310_v16, %v1422_v24  ;;  %vm1343_vm0 = vcmp.ge.f32.partialorder %v1311_v25, 0.0  ;;  %v1423_v52 = vmul.f32 %v1388_v18, %v1311_v25  ;;  %v1313_v28 = vadd.f32 %v2536_v29, %v1195_v22  ;;  %v1126_v53 = vpop.f32.mrb[8].mxu0  ;;  %v1408_v24 = vpop.permute.xlu0 %1407 }
 0x207   : > { %1486 = vst [vmem:[%s2548_s20 + $0x60] sm:$0xff] %v1454_v44  ;;  %v1453_v55 = vsel %vm1341_vm15, %v1309_v21, %v1421_v27  ;;  %vm1344_vm1 = vcmp.ge.f32.partialorder %v1312_v41, 0.0  ;;  %v1424_v56 = vmul.f32 %v1388_v18, %v1312_v41  ;;  %v1314_v57 = vadd.f32 %v2538_v30, %v1126_v53  ;;  %v1128_v58 = vpop.f32.mrb[9].mxu0 }
 0x208   : > { %1485 = vst [vmem:[%s2548_s20 + $0x58] sm:$0xff] %v1453_v55  ;;  %v1455_v59 = vsel %vm1343_vm0, %v1311_v25, %v1423_v52  ;;  %vm1345_vm2 = vcmp.ge.f32.partialorder %v1313_v28, 0.0  ;;  %v1425_v60 = vmul.f32 %v1388_v18, %v1313_v28  ;;  %v1315_v33 = vadd.f32 %v2538_v30, %v1128_v58  ;;  %v1199_v61 = vpop.f32.mrb[8].mxu1  ;;  %v1130_v29 = vpop.f32.mrb[10].mxu0 }
 0x209   : > { %1487 = vst [vmem:[%s2548_s20 + $0x68] sm:$0xff] %v1455_v59  ;;  %v1456_v32 = vsel %vm1344_vm1, %v1312_v41, %v1424_v56  ;;  %vm1346_vm3 = vcmp.ge.f32.partialorder %v1314_v57, 0.0  ;;  %v1426_v37 = vmul.f32 %v1393_v54, %v1314_v57  ;;  %v1316_v34 = vadd.f32 %v2538_v30, %v1199_v61  ;;  %v1201_v36 = vpop.f32.mrb[9].mxu1  ;;  %v1132_v38 = vpop.f32.mrb[11].mxu0 }
 0x20a   : > { %1488 = vst [vmem:[%s2548_s20 + $0x70] sm:$0xff] %v1456_v32  ;;  %v1457_v39 = vsel %vm1345_vm2, %v1313_v28, %v1425_v60  ;;  %vm1347_vm4 = vcmp.ge.f32.partialorder %v1315_v33, 0.0  ;;  %v1427_v40 = vmul.f32 %v1393_v54, %v1315_v33  ;;  %v1318_v43 = vadd.f32 %v2540_v31, %v1130_v29  ;;  %v1203_v45 = vpop.f32.mrb[10].mxu1  ;;  %v1532_v32 = vld [vmem:[%s2548_s20 + $0x8] sm:$0xff] (%p2171_p10) }
 0x20b   : > { %1489 = vst [vmem:[%s2548_s20 + $0x78] sm:$0xff] %v1457_v39  ;;  %v1458_v46 = vsel %vm1346_vm3, %v1314_v57, %v1426_v37  ;;  %vm1348_vm5 = vcmp.ge.f32.partialorder %v1316_v34, 0.0  ;;  %v1428_v47 = vmul.f32 %v1393_v54, %v1316_v34  ;;  %v1317_v49 = vadd.f32 %v2538_v30, %v1201_v36  ;;  %v1205_v51 = vpop.f32.mrb[11].mxu1  ;;  %v1534_v37 = vld [vmem:[%s2548_s20 + $0x10] sm:$0xff] (%p2171_p10)  ;;  %v1538_v36 = vld [vmem:[%s2548_s20 + $0x20] sm:$0xff] (%p2171_p10)  ;;  %1533 = vst [vmem:[%s2622_s13 + $0x8] sm:$0xff] (%p2171_p10), %v1532_v32 }
 0x20c   : > { %1490 = vst [vmem:[%s2548_s20 + $0x80] sm:$0xff] %v1458_v46  ;;  %v1459_v50 = vsel %vm1347_vm4, %v1315_v33, %v1427_v40  ;;  %vm1350_vm6 = vcmp.ge.f32.partialorder %v1318_v43, 0.0  ;;  %v1430_v62 = vmul.f32 %v1398_v42, %v1318_v43  ;;  %v1319_v63 = vadd.f32 %v2540_v31, %v1132_v38  ;;  %v1540_v38 = vld [vmem:[%s2548_s20 + $0x28] sm:$0xff] (%p2171_p10)  ;;  %v1542_v39 = vld [vmem:[%s2548_s20 + $0x30] sm:$0xff] (%p2171_p10)  ;;  %v1544_v40 = vld [vmem:[%s2548_s20 + $0x38] sm:$0xff] (%p2171_p10) }
 0x20d   : > { %1491 = vst [vmem:[%s2548_s20 + $0x88] sm:$0xff] %v1459_v50  ;;  %v1460_v0 = vsel %vm1348_vm5, %v1316_v34, %v1428_v47  ;;  %vm1349_vm7 = vcmp.ge.f32.partialorder %v1317_v49, 0.0  ;;  %v1429_v1 = vmul.f32 %v1393_v54, %v1317_v49  ;;  %v1320_v2 = vadd.f32 %v2540_v31, %v1203_v45  ;;  %v1536_v34 = vld [vmem:[%s2548_s20 + $0x18] sm:$0xff] (%p2171_p10)  ;;  %v1548_v45 = vld [vmem:[%s2548_s20 + $0x48] sm:$0xff] (%p2171_p10)  ;;  %1535 = vst [vmem:[%s2622_s13 + $0x10] sm:$0xff] (%p2171_p10), %v1534_v37 }
 0x20e   : > { %1492 = vst [vmem:[%s2548_s20 + $0x90] sm:$0xff] %v1460_v0  ;;  %v1462_v3 = vsel %vm1350_vm6, %v1318_v43, %v1430_v62  ;;  %vm1351_vm8 = vcmp.ge.f32.partialorder %v1319_v63, 0.0  ;;  %v1431_v4 = vmul.f32 %v1398_v42, %v1319_v63  ;;  %v1321_v30 = vadd.f32 %v2540_v31, %v1205_v51  ;;  %v1136_v5 = vpop.f32.mrb[12].mxu0  ;;  %v1546_v43 = vld [vmem:[%s2548_s20 + $0x40] sm:$0xff] (%p2171_p10)  ;;  %1537 = vst [vmem:[%s2622_s13 + $0x18] sm:$0xff] (%p2171_p10), %v1536_v34 }
 0x20f   : > { %1494 = vst [vmem:[%s2548_s20 + $0xa0] sm:$0xff] %v1462_v3  ;;  %v1461_v7 = vsel %vm1349_vm7, %v1317_v49, %v1429_v1  ;;  %vm1352_vm9 = vcmp.ge.f32.partialorder %v1320_v2, 0.0  ;;  %v1432_v8 = vmul.f32 %v1398_v42, %v1320_v2  ;;  %v1322_v9 = vadd.f32 %v2542_v35, %v1136_v5  ;;  %v1138_v10 = vpop.f32.mrb[13].mxu0  ;;  %v1552_v46 = vld [vmem:[%s2548_s20 + $0x58] sm:$0xff] (%p2171_p10)  ;;  %1539 = vst [vmem:[%s2622_s13 + $0x40] sm:$0xff] (%p2171_p10), %v1538_v36  ;;  %v1554_v47 = vld [vmem:[%s2548_s20 + $0x60] sm:$0xff] (%p2171_p10) }
 0x210   : > { %1493 = vst [vmem:[%s2548_s20 + $0x98] sm:$0xff] %v1461_v7  ;;  %v1463_v11 = vsel %vm1351_vm8, %v1319_v63, %v1431_v4  ;;  %vm1353_vm10 = vcmp.ge.f32.partialorder %v1321_v30, 0.0  ;;  %v1433_v12 = vmul.f32 %v1398_v42, %v1321_v30  ;;  %v1323_v13 = vadd.f32 %v2542_v35, %v1138_v10  ;;  %v1209_v14 = vpop.f32.mrb[12].mxu1  ;;  %v1140_v31 = vpop.f32.mrb[14].mxu0  ;;  %v1550_v42 = vld [vmem:[%s2548_s20 + $0x50] sm:$0xff] (%p2171_p10)  ;;  %1541 = vst [vmem:[%s2622_s13 + $0x48] sm:$0xff] (%p2171_p10), %v1540_v38 }
 0x211   : > { %1495 = vst [vmem:[%s2548_s20 + $0xa8] sm:$0xff] %v1463_v11  ;;  %v1464_v15 = vsel %vm1352_vm9, %v1320_v2, %v1432_v8  ;;  %vm1354_vm11 = vcmp.ge.f32.partialorder %v1322_v9, 0.0  ;;  %v1434_v16 = vmul.f32 %v1403_v6, %v1322_v9  ;;  %v1324_v17 = vadd.f32 %v2542_v35, %v1209_v14  ;;  %v1211_v18 = vpop.f32.mrb[13].mxu1  ;;  %v1142_v19 = vpop.f32.mrb[15].mxu0  ;;  %1543 = vst [vmem:[%s2622_s13 + $0x50] sm:$0xff] (%p2171_p10), %v1542_v39  ;;  %v1556_v49 = vld [vmem:[%s2548_s20 + $0x68] sm:$0xff] (%p2171_p10) }
 0x212   : > { %1496 = vst [vmem:[%s2548_s20 + $0xb0] sm:$0xff] %v1464_v15  ;;  %v1465_v20 = vsel %vm1353_vm10, %v1321_v30, %v1433_v12  ;;  %vm1355_vm12 = vcmp.ge.f32.partialorder %v1323_v13, 0.0  ;;  %v1435_v21 = vmul.f32 %v1403_v6, %v1323_v13  ;;  %v1326_v22 = vadd.f32 %v2544_v48, %v1140_v31  ;;  %v1213_v23 = vpop.f32.mrb[14].mxu1  ;;  %1545 = vst [vmem:[%s2622_s13 + $0x58] sm:$0xff] (%p2171_p10), %v1544_v40  ;;  %v1558_v51 = vld [vmem:[%s2548_s20 + $0x70] sm:$0xff] (%p2171_p10)  ;;  %v1560_v50 = vld [vmem:[%s2548_s20 + $0x78] sm:$0xff] (%p2171_p10) }
 0x213   : > { %1497 = vst [vmem:[%s2548_s20 + $0xb8] sm:$0xff] %v1465_v20  ;;  %v1466_v25 = vsel %vm1354_vm11, %v1322_v9, %v1434_v16  ;;  %vm1356_vm13 = vcmp.ge.f32.partialorder %v1324_v17, 0.0  ;;  %v1436_v26 = vmul.f32 %v1403_v6, %v1324_v17  ;;  %v1325_v27 = vadd.f32 %v2542_v35, %v1211_v18  ;;  %v1215_v41 = vpop.f32.mrb[15].mxu1  ;;  %1547 = vst [vmem:[%s2622_s13 + $0x80] sm:$0xff] (%p2171_p10), %v1546_v43  ;;  %v1562_v62 = vld [vmem:[%s2548_s20 + $0x80] sm:$0xff] (%p2171_p10) }
 0x214   : > { %1498 = vst [vmem:[%s2548_s20 + $0xc0] sm:$0xff] %v1466_v25  ;;  %v1467_v44 = vsel %vm1355_vm12, %v1323_v13, %v1435_v21  ;;  %vm1358_vm14 = vcmp.ge.f32.partialorder %v1326_v22, 0.0  ;;  %v1438_v52 = vmul.f32 %v1408_v24, %v1326_v22  ;;  %v1327_v28 = vadd.f32 %v2544_v48, %v1142_v19  ;;  %1549 = vst [vmem:[%s2622_s13 + $0x88] sm:$0xff] (%p2171_p10), %v1548_v45  ;;  %v1564_v63 = vld [vmem:[%s2548_s20 + $0x88] sm:$0xff] (%p2171_p10) }
 0x215   : > { %1499 = vst [vmem:[%s2548_s20 + $0xc8] sm:$0xff] %v1467_v44  ;;  %v1468_v53 = vsel %vm1356_vm13, %v1324_v17, %v1436_v26  ;;  %vm1357_vm15 = vcmp.ge.f32.partialorder %v1325_v27, 0.0  ;;  %v1437_v54 = vmul.f32 %v1403_v6, %v1325_v27  ;;  %v1328_v55 = vadd.f32 %v2544_v48, %v1213_v23  ;;  %1512 = sbr.rel (!%p2171_p10) target bundleno = 548 (0x224), region = 90  ;;  %1551 = vst [vmem:[%s2622_s13 + $0x90] sm:$0xff] (%p2171_p10), %v1550_v42  ;;  %v1566_v0 = vld [vmem:[%s2548_s20 + $0x90] sm:$0xff] (%p2171_p10) }
 0x216   : > { %1500 = vst [vmem:[%s2548_s20 + $0xd0] sm:$0xff] %v1468_v53  ;;  %v1470_v56 = vsel %vm1358_vm14, %v1326_v22, %v1438_v52  ;;  %vm1359_vm0 = vcmp.ge.f32.partialorder %v1327_v28, 0.0  ;;  %v1439_v35 = vmul.f32 %v1408_v24, %v1327_v28  ;;  %v1329_v57 = vadd.f32 %v2544_v48, %v1215_v41  ;;  %v1530_v48 = vld [vmem:[%s2548_s20] sm:$0xff] (%p2171_p10)  ;;  %1553 = vst [vmem:[%s2622_s13 + $0x98] sm:$0xff] (%p2171_p10), %v1552_v46 }
 0x217   : > { %1502 = vst [vmem:[%s2548_s20 + $0xe0] sm:$0xff] %v1470_v56  ;;  %v1469_v58 = vsel %vm1357_vm15, %v1325_v27, %v1437_v54  ;;  %vm1360_vm1 = vcmp.ge.f32.partialorder %v1328_v55, 0.0  ;;  %v1440_v59 = vmul.f32 %v1408_v24, %v1328_v55  ;;  %1531 = vst [vmem:[%s2622_s13] sm:$0xff] (%p2171_p10), %v1530_v48  ;;  %v1568_v1 = vld [vmem:[%s2548_s20 + $0x98] sm:$0xff] (%p2171_p10)  ;;  %v1570_v2 = vld [vmem:[%s2548_s20 + $0xa0] sm:$0xff] (%p2171_p10) }
 0x218   : > { %1501 = vst [vmem:[%s2548_s20 + $0xd8] sm:$0xff] %v1469_v58  ;;  %v1471_v60 = vsel %vm1359_vm0, %v1327_v28, %v1439_v35  ;;  %vm1361_vm2 = vcmp.ge.f32.partialorder %v1329_v57, 0.0  ;;  %v1441_v33 = vmul.f32 %v1408_v24, %v1329_v57  ;;  %1555 = vst [vmem:[%s2622_s13 + $0xc0] sm:$0xff] (%p2171_p10), %v1554_v47  ;;  %v1572_v3 = vld [vmem:[%s2548_s20 + $0xa8] sm:$0xff] (%p2171_p10) }
 0x219   : > { %1503 = vst [vmem:[%s2548_s20 + $0xe8] sm:$0xff] %v1471_v60  ;;  %v1472_v61 = vsel %vm1360_vm1, %v1328_v55, %v1440_v59  ;;  %1557 = vst [vmem:[%s2622_s13 + $0xc8] sm:$0xff] (%p2171_p10), %v1556_v49  ;;  %v1574_v4 = vld [vmem:[%s2548_s20 + $0xb0] sm:$0xff] (%p2171_p10) }
 0x21a   : > { %1504 = vst [vmem:[%s2548_s20 + $0xf0] sm:$0xff] %v1472_v61  ;;  %v1473_v29 = vsel %vm1361_vm2, %v1329_v57, %v1441_v33  ;;  %1559 = vst [vmem:[%s2622_s13 + $0xd0] sm:$0xff] (%p2171_p10), %v1558_v51  ;;  %v1576_v30 = vld [vmem:[%s2548_s20 + $0xb8] sm:$0xff] (%p2171_p10) }
 0x21b   : > { %1505 = vst [vmem:[%s2548_s20 + $0xf8] sm:$0xff] %v1473_v29  ;;  %1561 = vst [vmem:[%s2622_s13 + $0xd8] sm:$0xff] (%p2171_p10), %v1560_v50  ;;  %v1578_v5 = vld [vmem:[%s2548_s20 + $0xc0] sm:$0xff] (%p2171_p10) }
 0x21c   : > { %1563 = vst [vmem:[%s2622_s13 + $0x100] sm:$0xff] %v1562_v62  ;;  %1565 = vst [vmem:[%s2622_s13 + $0x108] sm:$0xff] %v1564_v63  ;;  %v1580_v6 = vld [vmem:[%s2548_s20 + $0xc8] sm:$0xff] }
 0x21d   : > { %1567 = vst [vmem:[%s2622_s13 + $0x110] sm:$0xff] %v1566_v0  ;;  %1569 = vst [vmem:[%s2622_s13 + $0x118] sm:$0xff] %v1568_v1  ;;  %v1582_v7 = vld [vmem:[%s2548_s20 + $0xd0] sm:$0xff] }
 0x21e   : > { %1571 = vst [vmem:[%s2622_s13 + $0x140] sm:$0xff] %v1570_v2  ;;  %1573 = vst [vmem:[%s2622_s13 + $0x148] sm:$0xff] %v1572_v3  ;;  %v1586_v9 = vld [vmem:[%s2548_s20 + $0xe0] sm:$0xff] }
 0x21f   : > { %1575 = vst [vmem:[%s2622_s13 + $0x150] sm:$0xff] %v1574_v4  ;;  %1577 = vst [vmem:[%s2622_s13 + $0x158] sm:$0xff] %v1576_v30  ;;  %v1584_v8 = vld [vmem:[%s2548_s20 + $0xd8] sm:$0xff] }
 0x220   : > { %1579 = vst [vmem:[%s2622_s13 + $0x180] sm:$0xff] %v1578_v5  ;;  %1581 = vst [vmem:[%s2622_s13 + $0x188] sm:$0xff] %v1580_v6  ;;  %v1588_v10 = vld [vmem:[%s2548_s20 + $0xe8] sm:$0xff] }
 0x221   : > { %1583 = vst [vmem:[%s2622_s13 + $0x190] sm:$0xff] %v1582_v7  ;;  %1585 = vst [vmem:[%s2622_s13 + $0x198] sm:$0xff] %v1584_v8  ;;  %v1590_v11 = vld [vmem:[%s2548_s20 + $0xf0] sm:$0xff] }
 0x222   : > { %1587 = vst [vmem:[%s2622_s13 + $0x1c0] sm:$0xff] %v1586_v9  ;;  %1589 = vst [vmem:[%s2622_s13 + $0x1c8] sm:$0xff] %v1588_v10  ;;  %v1592_v12 = vld [vmem:[%s2548_s20 + $0xf8] sm:$0xff] }
 0x223   : > { %1591 = vst [vmem:[%s2622_s13 + $0x1d0] sm:$0xff] %v1590_v11  ;;  %1593 = vst [vmem:[%s2622_s13 + $0x1d8] sm:$0xff] %v1592_v12 }
 0x224 PF: > { %s15_s26 = sadd.s32 1, %s2053_s26   ;;  %s2717_s18 = smov %s2025_s19 }
 0x225   : > { %p12_p1 = scmp.ge.s32.totalorder %s15_s26, 6   ;;  %s2718_s19 = smov %s2179_s28 }
 0x226   : > { %s2719_s20 = smov %s2033_s21  ;;  %s2720_s21 = smov %s2176_s17 }
 0x227   : > { %s2721_s22 = smov %s2045_s24  ;;  %s2722_s23 = smov %s2049_s25 }
 0x228   : > { %s2723_s24 = smov %s2139_s6  ;;  %s2724_s25 = smov %s2728_s29 }
 0x229   :  { %14 = sbr.rel (!%p12_p1) target bundleno = 7 (0x7), region = 154 }

</bundles_post_ra>
